<compile_context>
chip_gen: v5e
topology: v5e:2x2
jax: 0.10.0
libtpu: 0.0.40
codegen_flags: <defaults>
</compile_context>

<pallas_src>
import functools

import jax
import jax.numpy as jnp
from jax.experimental import pallas as pl
from jax.experimental.pallas import tpu as pltpu


def _elu(x):
    # ELU with alpha=1 (torch default).
    # TODO(synk): jnp.expm1 is marginally more accurate for very negative x.
    return jnp.where(x > 0, x, jnp.exp(x) - 1.0)


def _softmax_over_features(x):
    # Softmax over axis 0 (the n_out/feature axis); each lane (pairwise row)
    # is an independent distribution.  Reduction is over a couple of sublanes.
    m = jnp.max(x, axis=0, keepdims=True)
    e = jnp.exp(x - m)
    return e * pl.reciprocal(jnp.sum(e, axis=0, keepdims=True), approx=True)


def _know_encoder_kernel(*refs, tau, thre, hard):
    if hard:
        (pT_ref, qT_ref, w2T_ref, b2_ref, w3T_ref, b3_ref,
         ww_ref, prob_ref, h1_ref) = refs
        noiseT_ref = None
    else:
        (pT_ref, qT_ref, noiseT_ref, w2T_ref, b2_ref, w3T_ref, b3_ref,
         ww_ref, prob_ref, h1_ref) = refs

    pT = pT_ref[0]                      # (n_hid, S): fc1(left)(inputs[b, j]) + b1
    qT = qT_ref[0]                      # (n_hid, S): fc1(right)(inputs[b, i])
    S = pT.shape[1]

    # Pairwise fc1, lane-dense: column r = i*S + j holds
    #   elu(P[b, j] + Q[b, i])   (b1 already folded into P in the wrapper).
    # Built with static ref-slice stores into VMEM scratch (no HBM slab).
    # TODO(synk): for very long sequences, tile the i-loop across grid steps
    # so the (n_hid, S*S) scratch stays comfortably inside VMEM.
    for i in range(S):
        h1_ref[:, i * S:(i + 1) * S] = _elu(pT + qT[:, i:i + 1])
    h1 = h1_ref[...]                                              # (n_hid, S*S)

    # TODO(synk): dropout between fc1 and fc2 is identity at inference time.
    h2 = _elu(jnp.dot(w2T_ref[...], h1,
                      preferred_element_type=jnp.float32) + b2_ref[...])
    logits = (jnp.dot(w3T_ref[...], h2,
                      preferred_element_type=jnp.float32) + b3_ref[...])  # (n_out, S*S)

    prob = _softmax_over_features(logits)
    prob_ref[0] = prob.astype(prob_ref.dtype)
    if hard:
        # ww_edges = (prob > thre).float()
        ww_ref[0] = (prob > thre).astype(ww_ref.dtype)
    else:
        # gumbel_softmax (soft): softmax((logits + gumbel_noise) / tau)
        ww_ref[0] = _softmax_over_features(
            (logits + noiseT_ref[0]) * (1.0 / tau)).astype(ww_ref.dtype)


def know_encoder_forward(inputs, params, gumbel_noise, temp, hard, thre):
    """inputs: (B, S, n_in) f32.  Returns (ww_edges, prob), each (B, S, S, n_out)."""
    B, S, n_in = inputs.shape
    n_hid = params["w1"].shape[1]
    n_out = params["w3"].shape[1]

    # Hoist fc1 out of the S x S pairwise product (kills the (B*S*S, 2*n_in)
    # HBM slab and the S x redundant fc1 FLOPs).
    # torch cat order: x[b, i, j] = [inputs[b, j], inputs[b, i]].
    p = inputs @ params["w1"][:n_in] + params["b1"]        # (B, S, n_hid), indexed by j
    q = inputs @ params["w1"][n_in:]                       # (B, S, n_hid), indexed by i
    pT = jnp.transpose(p, (0, 2, 1)).astype(jnp.float32)   # (B, n_hid, S)
    qT = jnp.transpose(q, (0, 2, 1)).astype(jnp.float32)   # (B, n_hid, S)

    w2T = params["w2"].T.astype(jnp.float32)               # (n_hid, n_hid)
    b2c = params["b2"].T.astype(jnp.float32)               # (n_hid, 1)
    w3T = params["w3"].T.astype(jnp.float32)               # (n_out, n_hid)
    b3c = params["b3"].T.astype(jnp.float32)               # (n_out, 1)

    batch_spec = lambda shape: pl.BlockSpec(shape, lambda b: (b, 0, 0))
    full_spec = lambda shape: pl.BlockSpec(shape, lambda b: (0, 0))

    in_specs = [batch_spec((1, n_hid, S)),                  # P^T (by j)
                batch_spec((1, n_hid, S))]                  # Q^T (by i)
    operands = [pT, qT]
    if not hard:
        # Only the soft path needs the gumbel noise; don't DMA it otherwise.
        noiseT = jnp.transpose(gumbel_noise.reshape(B, S * S, n_out),
                               (0, 2, 1)).astype(jnp.float32)   # (B, n_out, S*S)
        in_specs.append(batch_spec((1, n_out, S * S)))
        operands.append(noiseT)
    in_specs += [full_spec((n_hid, n_hid)),                 # W2^T
                 full_spec((n_hid, 1)),                     # b2 (column)
                 full_spec((n_out, n_hid)),                 # W3^T (fc_out)
                 full_spec((n_out, 1))]                     # b3 (column)
    operands += [w2T, b2c, w3T, b3c]

    kernel = functools.partial(_know_encoder_kernel, tau=float(temp),
                               thre=float(thre), hard=bool(hard))

    # Outputs are produced lane-dense as (B, n_out, S*S); wrapper transposes back.
    ww_t, prob_t = pl.pallas_call(
        kernel,
        out_shape=(jax.ShapeDtypeStruct((B, n_out, S * S), jnp.float32),
                   jax.ShapeDtypeStruct((B, n_out, S * S), jnp.float32)),
        grid=(B,),
        in_specs=in_specs,
        out_specs=(batch_spec((1, n_out, S * S)),
                   batch_spec((1, n_out, S * S))),
        scratch_shapes=[pltpu.VMEM((n_hid, S * S), jnp.float32)],
        compiler_params=pltpu.CompilerParams(
            dimension_semantics=("parallel",)),
    )(*operands)

    ww = jnp.transpose(ww_t, (0, 2, 1)).reshape(B, S, S, n_out)
    prob = jnp.transpose(prob_t, (0, 2, 1)).reshape(B, S, S, n_out)
    return ww, prob


def reference_forward(inputs, params, gumbel_noise, temp, hard, thre):
    B, S, n_in = inputs.shape
    left = jnp.broadcast_to(inputs[:, None, :, :], (B, S, S, n_in))
    right = jnp.broadcast_to(inputs[:, :, None, :], (B, S, S, n_in))
    x = jnp.concatenate([left, right], axis=-1)
    h = jax.nn.elu(x @ params["w1"] + params["b1"][0])
    h = jax.nn.elu(h @ params["w2"] + params["b2"][0])
    logits = h @ params["w3"] + params["b3"][0]
    prob = jax.nn.softmax(logits, axis=-1)
    if hard:
        ww = (prob > thre).astype(jnp.float32)
    else:
        ww = jax.nn.softmax((logits + gumbel_noise) / temp, axis=-1)
    return ww, prob


if __name__ == "__main__":
    key = jax.random.PRNGKey(0)
    B, S, n_in, n_hid, n_out = 2, 8, 8, 32, 2   # n_in is the per-token feature dim

    k1, k2, k3, k4, k5 = jax.random.split(key, 5)

    def xavier_normal(k, fan_in, fan_out):
        std = (2.0 / (fan_in + fan_out)) ** 0.5
        return std * jax.random.normal(k, (fan_in, fan_out), jnp.float32)

    # Deterministic synthetic parameters (xavier-normal weights, bias=0.1),
    # stored as (in, out) so the math is x @ W + b.
    params = {
        "w1": xavier_normal(k1, 2 * n_in, n_hid),
        "b1": jnp.full((1, n_hid), 0.1, jnp.float32),
        "w2": xavier_normal(k2, n_hid, n_hid),
        "b2": jnp.full((1, n_hid), 0.1, jnp.float32),
        "w3": xavier_normal(k3, n_hid, n_out),
        "b3": jnp.full((1, n_out), 0.1, jnp.float32),
    }

    inputs = jax.random.normal(k4, (B, S, n_in), jnp.float32)

    # Gumbel noise (matches sample_gumbel: -log(eps - log(U + eps)))
    eps = 1e-10
    U = jax.random.uniform(k5, (B, S, S, n_out), jnp.float32)
    gumbel_noise = -jnp.log(eps - jnp.log(U + eps))

    temp, thre = 0.5, 0.5

    # Tolerances are loosened beyond 1e-5 because the in-kernel softmax uses
    # the EUP approximate reciprocal (per the performance review).
    ATOL = 5e-3

    # hard = False path (soft gumbel-softmax edges)
    ww_soft, prob_soft = know_encoder_forward(inputs, params, gumbel_noise,
                                              temp, False, thre)
    jax.block_until_ready((ww_soft, prob_soft))
    ww_ref, prob_ref = reference_forward(inputs, params, gumbel_noise,
                                         temp, False, thre)
    assert jnp.allclose(prob_soft, prob_ref, atol=ATOL, rtol=ATOL)
    assert jnp.allclose(ww_soft, ww_ref, atol=ATOL, rtol=ATOL)

    # hard = True path (thresholded edges); gumbel noise is neither needed nor DMA'd.
    ww_hard, prob_hard = know_encoder_forward(inputs, params, None,
                                              temp, True, thre)
    jax.block_until_ready((ww_hard, prob_hard))
    ww_ref_h, prob_ref_h = reference_forward(inputs, params, gumbel_noise,
                                             temp, True, thre)
    assert jnp.allclose(prob_hard, prob_ref_h, atol=ATOL, rtol=ATOL)
    # The 0/1 threshold can only legitimately flip where prob sits within the
    # approx-reciprocal error of thre; require exact agreement elsewhere.
    decided = jnp.abs(prob_ref_h - thre) > 1e-2
    assert jnp.all((ww_hard == ww_ref_h) | ~decided)

    print("KERNEL_OK")
</pallas_src>

<mosaic_0001>
module attributes {stable_mosaic.version = 11 : i64} {
  func.func @_know_encoder_kernel(%arg0: i32, %arg1: memref<1x32x8xf32, #tpu.memory_space<vmem>>, %arg2: memref<1x32x8xf32, #tpu.memory_space<vmem>>, %arg3: memref<1x2x64xf32, #tpu.memory_space<vmem>>, %arg4: memref<32x32xf32, #tpu.memory_space<vmem>>, %arg5: memref<32x1xf32, #tpu.memory_space<vmem>>, %arg6: memref<2x32xf32, #tpu.memory_space<vmem>>, %arg7: memref<2x1xf32, #tpu.memory_space<vmem>>, %arg8: memref<1x2x64xf32, #tpu.memory_space<vmem>>, %arg9: memref<1x2x64xf32, #tpu.memory_space<vmem>>, %arg10: memref<32x64xf32, #tpu.memory_space<vmem>>) attributes {dimension_semantics = [#tpu.dimension_semantics<parallel>], iteration_bounds = array<i64: 2>, scalar_prefetch = 0 : i64, scratch_operands = 1 : i64, tpu.core_type = #tpu.core_type<tc>, window_params = [{transform_indices = @transform_0, window_bounds = array<i64: 1, 32, 8>}, {transform_indices = @transform_1, window_bounds = array<i64: 1, 32, 8>}, {transform_indices = @transform_2, window_bounds = array<i64: 1, 2, 64>}, {pipeline_mode = #tpu.pipeline_mode<synchronous>, transform_indices = @transform_3, window_bounds = array<i64: 32, 32>}, {pipeline_mode = #tpu.pipeline_mode<synchronous>, transform_indices = @transform_4, window_bounds = array<i64: 32, 1>}, {pipeline_mode = #tpu.pipeline_mode<synchronous>, transform_indices = @transform_5, window_bounds = array<i64: 2, 32>}, {pipeline_mode = #tpu.pipeline_mode<synchronous>, transform_indices = @transform_6, window_bounds = array<i64: 2, 1>}, {transform_indices = @transform_7, window_bounds = array<i64: 1, 2, 64>}, {transform_indices = @transform_8, window_bounds = array<i64: 1, 2, 64>}]} {
    %c0 = arith.constant 0 : index
    %c0_0 = arith.constant 0 : index
    %c0_1 = arith.constant 0 : index
    %0 = vector.load %arg1[%c0, %c0_0, %c0_1] : memref<1x32x8xf32, #tpu.memory_space<vmem>>, vector<1x32x8xf32>
    %1 = vector.shape_cast %0 : vector<1x32x8xf32> to vector<32x8xf32>
    %c0_2 = arith.constant 0 : index
    %c0_3 = arith.constant 0 : index
    %c0_4 = arith.constant 0 : index
    %2 = vector.load %arg2[%c0_2, %c0_3, %c0_4] : memref<1x32x8xf32, #tpu.memory_space<vmem>>, vector<1x32x8xf32>
    %3 = vector.shape_cast %2 : vector<1x32x8xf32> to vector<32x8xf32>
    %4 = vector.extract_strided_slice %3 {offsets = [0, 0], sizes = [32, 1], strides = [1, 1]} : vector<32x8xf32> to vector<32x1xf32>
    %5 = vector.broadcast %4 : vector<32x1xf32> to vector<32x8xf32>
    %6 = arith.addf %1, %5 : vector<32x8xf32>
    %cst = arith.constant 0.000000e+00 : f32
    %7 = vector.broadcast %cst : f32 to vector<32x8xf32>
    %8 = arith.cmpf ogt, %6, %7 : vector<32x8xf32>
    %9 = math.exp %6 : vector<32x8xf32>
    %cst_5 = arith.constant 1.000000e+00 : f32
    %10 = vector.broadcast %cst_5 : f32 to vector<32x8xf32>
    %11 = arith.subf %9, %10 : vector<32x8xf32>
    %12 = arith.select %8, %6, %11 : vector<32x8xi1>, vector<32x8xf32>
    %c0_6 = arith.constant 0 : index
    %c0_7 = arith.constant 0 : index
    %13 = vector.load %arg10[%c0_6, %c0_7] : memref<32x64xf32, #tpu.memory_space<vmem>>, vector<32x8xf32>
    tpu.vector_store %arg10[%c0_6, %c0_7], %12 {strides = array<i32>} : memref<32x64xf32, #tpu.memory_space<vmem>>, vector<32x8xf32>,
    %14 = vector.extract_strided_slice %3 {offsets = [0, 1], sizes = [32, 1], strides = [1, 1]} : vector<32x8xf32> to vector<32x1xf32>
    %15 = vector.broadcast %14 : vector<32x1xf32> to vector<32x8xf32>
    %16 = arith.addf %1, %15 : vector<32x8xf32>
    %cst_8 = arith.constant 0.000000e+00 : f32
    %17 = vector.broadcast %cst_8 : f32 to vector<32x8xf32>
    %18 = arith.cmpf ogt, %16, %17 : vector<32x8xf32>
    %19 = math.exp %16 : vector<32x8xf32>
    %cst_9 = arith.constant 1.000000e+00 : f32
    %20 = vector.broadcast %cst_9 : f32 to vector<32x8xf32>
    %21 = arith.subf %19, %20 : vector<32x8xf32>
    %22 = arith.select %18, %16, %21 : vector<32x8xi1>, vector<32x8xf32>
    %c0_10 = arith.constant 0 : index
    %c8 = arith.constant 8 : index
    %23 = vector.load %arg10[%c0_10, %c8] : memref<32x64xf32, #tpu.memory_space<vmem>>, vector<32x8xf32>
    tpu.vector_store %arg10[%c0_10, %c8], %22 {strides = array<i32>} : memref<32x64xf32, #tpu.memory_space<vmem>>, vector<32x8xf32>,
    %24 = vector.extract_strided_slice %3 {offsets = [0, 2], sizes = [32, 1], strides = [1, 1]} : vector<32x8xf32> to vector<32x1xf32>
    %25 = vector.broadcast %24 : vector<32x1xf32> to vector<32x8xf32>
    %26 = arith.addf %1, %25 : vector<32x8xf32>
    %cst_11 = arith.constant 0.000000e+00 : f32
    %27 = vector.broadcast %cst_11 : f32 to vector<32x8xf32>
    %28 = arith.cmpf ogt, %26, %27 : vector<32x8xf32>
    %29 = math.exp %26 : vector<32x8xf32>
    %cst_12 = arith.constant 1.000000e+00 : f32
    %30 = vector.broadcast %cst_12 : f32 to vector<32x8xf32>
    %31 = arith.subf %29, %30 : vector<32x8xf32>
    %32 = arith.select %28, %26, %31 : vector<32x8xi1>, vector<32x8xf32>
    %c0_13 = arith.constant 0 : index
    %c16 = arith.constant 16 : index
    %33 = vector.load %arg10[%c0_13, %c16] : memref<32x64xf32, #tpu.memory_space<vmem>>, vector<32x8xf32>
    tpu.vector_store %arg10[%c0_13, %c16], %32 {strides = array<i32>} : memref<32x64xf32, #tpu.memory_space<vmem>>, vector<32x8xf32>,
    %34 = vector.extract_strided_slice %3 {offsets = [0, 3], sizes = [32, 1], strides = [1, 1]} : vector<32x8xf32> to vector<32x1xf32>
    %35 = vector.broadcast %34 : vector<32x1xf32> to vector<32x8xf32>
    %36 = arith.addf %1, %35 : vector<32x8xf32>
    %cst_14 = arith.constant 0.000000e+00 : f32
    %37 = vector.broadcast %cst_14 : f32 to vector<32x8xf32>
    %38 = arith.cmpf ogt, %36, %37 : vector<32x8xf32>
    %39 = math.exp %36 : vector<32x8xf32>
    %cst_15 = arith.constant 1.000000e+00 : f32
    %40 = vector.broadcast %cst_15 : f32 to vector<32x8xf32>
    %41 = arith.subf %39, %40 : vector<32x8xf32>
    %42 = arith.select %38, %36, %41 : vector<32x8xi1>, vector<32x8xf32>
    %c0_16 = arith.constant 0 : index
    %c24 = arith.constant 24 : index
    %43 = vector.load %arg10[%c0_16, %c24] : memref<32x64xf32, #tpu.memory_space<vmem>>, vector<32x8xf32>
    tpu.vector_store %arg10[%c0_16, %c24], %42 {strides = array<i32>} : memref<32x64xf32, #tpu.memory_space<vmem>>, vector<32x8xf32>,
    %44 = vector.extract_strided_slice %3 {offsets = [0, 4], sizes = [32, 1], strides = [1, 1]} : vector<32x8xf32> to vector<32x1xf32>
    %45 = vector.broadcast %44 : vector<32x1xf32> to vector<32x8xf32>
    %46 = arith.addf %1, %45 : vector<32x8xf32>
    %cst_17 = arith.constant 0.000000e+00 : f32
    %47 = vector.broadcast %cst_17 : f32 to vector<32x8xf32>
    %48 = arith.cmpf ogt, %46, %47 : vector<32x8xf32>
    %49 = math.exp %46 : vector<32x8xf32>
    %cst_18 = arith.constant 1.000000e+00 : f32
    %50 = vector.broadcast %cst_18 : f32 to vector<32x8xf32>
    %51 = arith.subf %49, %50 : vector<32x8xf32>
    %52 = arith.select %48, %46, %51 : vector<32x8xi1>, vector<32x8xf32>
    %c0_19 = arith.constant 0 : index
    %c32 = arith.constant 32 : index
    %53 = vector.load %arg10[%c0_19, %c32] : memref<32x64xf32, #tpu.memory_space<vmem>>, vector<32x8xf32>
    tpu.vector_store %arg10[%c0_19, %c32], %52 {strides = array<i32>} : memref<32x64xf32, #tpu.memory_space<vmem>>, vector<32x8xf32>,
    %54 = vector.extract_strided_slice %3 {offsets = [0, 5], sizes = [32, 1], strides = [1, 1]} : vector<32x8xf32> to vector<32x1xf32>
    %55 = vector.broadcast %54 : vector<32x1xf32> to vector<32x8xf32>
    %56 = arith.addf %1, %55 : vector<32x8xf32>
    %cst_20 = arith.constant 0.000000e+00 : f32
    %57 = vector.broadcast %cst_20 : f32 to vector<32x8xf32>
    %58 = arith.cmpf ogt, %56, %57 : vector<32x8xf32>
    %59 = math.exp %56 : vector<32x8xf32>
    %cst_21 = arith.constant 1.000000e+00 : f32
    %60 = vector.broadcast %cst_21 : f32 to vector<32x8xf32>
    %61 = arith.subf %59, %60 : vector<32x8xf32>
    %62 = arith.select %58, %56, %61 : vector<32x8xi1>, vector<32x8xf32>
    %c0_22 = arith.constant 0 : index
    %c40 = arith.constant 40 : index
    %63 = vector.load %arg10[%c0_22, %c40] : memref<32x64xf32, #tpu.memory_space<vmem>>, vector<32x8xf32>
    tpu.vector_store %arg10[%c0_22, %c40], %62 {strides = array<i32>} : memref<32x64xf32, #tpu.memory_space<vmem>>, vector<32x8xf32>,
    %64 = vector.extract_strided_slice %3 {offsets = [0, 6], sizes = [32, 1], strides = [1, 1]} : vector<32x8xf32> to vector<32x1xf32>
    %65 = vector.broadcast %64 : vector<32x1xf32> to vector<32x8xf32>
    %66 = arith.addf %1, %65 : vector<32x8xf32>
    %cst_23 = arith.constant 0.000000e+00 : f32
    %67 = vector.broadcast %cst_23 : f32 to vector<32x8xf32>
    %68 = arith.cmpf ogt, %66, %67 : vector<32x8xf32>
    %69 = math.exp %66 : vector<32x8xf32>
    %cst_24 = arith.constant 1.000000e+00 : f32
    %70 = vector.broadcast %cst_24 : f32 to vector<32x8xf32>
    %71 = arith.subf %69, %70 : vector<32x8xf32>
    %72 = arith.select %68, %66, %71 : vector<32x8xi1>, vector<32x8xf32>
    %c0_25 = arith.constant 0 : index
    %c48 = arith.constant 48 : index
    %73 = vector.load %arg10[%c0_25, %c48] : memref<32x64xf32, #tpu.memory_space<vmem>>, vector<32x8xf32>
    tpu.vector_store %arg10[%c0_25, %c48], %72 {strides = array<i32>} : memref<32x64xf32, #tpu.memory_space<vmem>>, vector<32x8xf32>,
    %74 = vector.extract_strided_slice %3 {offsets = [0, 7], sizes = [32, 1], strides = [1, 1]} : vector<32x8xf32> to vector<32x1xf32>
    %75 = vector.broadcast %74 : vector<32x1xf32> to vector<32x8xf32>
    %76 = arith.addf %1, %75 : vector<32x8xf32>
    %cst_26 = arith.constant 0.000000e+00 : f32
    %77 = vector.broadcast %cst_26 : f32 to vector<32x8xf32>
    %78 = arith.cmpf ogt, %76, %77 : vector<32x8xf32>
    %79 = math.exp %76 : vector<32x8xf32>
    %cst_27 = arith.constant 1.000000e+00 : f32
    %80 = vector.broadcast %cst_27 : f32 to vector<32x8xf32>
    %81 = arith.subf %79, %80 : vector<32x8xf32>
    %82 = arith.select %78, %76, %81 : vector<32x8xi1>, vector<32x8xf32>
    %c0_28 = arith.constant 0 : index
    %c56 = arith.constant 56 : index
    %83 = vector.load %arg10[%c0_28, %c56] : memref<32x64xf32, #tpu.memory_space<vmem>>, vector<32x8xf32>
    tpu.vector_store %arg10[%c0_28, %c56], %82 {strides = array<i32>} : memref<32x64xf32, #tpu.memory_space<vmem>>, vector<32x8xf32>,
    %c0_29 = arith.constant 0 : index
    %c0_30 = arith.constant 0 : index
    %84 = vector.load %arg10[%c0_29, %c0_30] : memref<32x64xf32, #tpu.memory_space<vmem>>, vector<32x64xf32>
    %c0_31 = arith.constant 0 : index
    %c0_32 = arith.constant 0 : index
    %85 = vector.load %arg4[%c0_31, %c0_32] : memref<32x32xf32, #tpu.memory_space<vmem>>, vector<32x32xf32>
    %cst_33 = arith.constant dense<0.000000e+00> : vector<32x64xf32>
    %86 = tpu.matmul %85, %84, %cst_33 {dimension_numbers = #tpu.dot_dimension_numbers<[1], [0], [0], [1], [0, 0, 1, 1], [], []>} : vector<32x32xf32>, vector<32x64xf32>, vector<32x64xf32> -> vector<32x64xf32>
    %c0_34 = arith.constant 0 : index
    %c0_35 = arith.constant 0 : index
    %87 = vector.load %arg5[%c0_34, %c0_35] : memref<32x1xf32, #tpu.memory_space<vmem>>, vector<32x1xf32>
    %88 = vector.broadcast %87 : vector<32x1xf32> to vector<32x64xf32>
    %89 = arith.addf %86, %88 : vector<32x64xf32>
    %cst_36 = arith.constant 0.000000e+00 : f32
    %90 = vector.broadcast %cst_36 : f32 to vector<32x64xf32>
    %91 = arith.cmpf ogt, %89, %90 : vector<32x64xf32>
    %92 = math.exp %89 : vector<32x64xf32>
    %cst_37 = arith.constant 1.000000e+00 : f32
    %93 = vector.broadcast %cst_37 : f32 to vector<32x64xf32>
    %94 = arith.subf %92, %93 : vector<32x64xf32>
    %95 = arith.select %91, %89, %94 : vector<32x64xi1>, vector<32x64xf32>
    %c0_38 = arith.constant 0 : index
    %c0_39 = arith.constant 0 : index
    %96 = vector.load %arg6[%c0_38, %c0_39] : memref<2x32xf32, #tpu.memory_space<vmem>>, vector<2x32xf32>
    %cst_40 = arith.constant dense<0.000000e+00> : vector<2x64xf32>
    %97 = tpu.matmul %96, %95, %cst_40 {dimension_numbers = #tpu.dot_dimension_numbers<[1], [0], [0], [1], [0, 0, 1, 1], [], []>} : vector<2x32xf32>, vector<32x64xf32>, vector<2x64xf32> -> vector<2x64xf32>
    %c0_41 = arith.constant 0 : index
    %c0_42 = arith.constant 0 : index
    %98 = vector.load %arg7[%c0_41, %c0_42] : memref<2x1xf32, #tpu.memory_space<vmem>>, vector<2x1xf32>
    %99 = vector.broadcast %98 : vector<2x1xf32> to vector<2x64xf32>
    %100 = arith.addf %97, %99 : vector<2x64xf32>
    %cst_43 = arith.constant dense<0xFF800000> : vector<64xf32>
    %101 = vector.multi_reduction <maximumf>, %100, %cst_43 [0] : vector<2x64xf32> to vector<64xf32>
    %102 = vector.shape_cast %101 : vector<64xf32> to vector<1x64xf32>
    %103 = vector.broadcast %102 : vector<1x64xf32> to vector<2x64xf32>
    %104 = arith.subf %100, %103 : vector<2x64xf32>
    %105 = math.exp %104 : vector<2x64xf32>
    %cst_44 = arith.constant dense<0.000000e+00> : vector<64xf32>
    %106 = vector.multi_reduction <add>, %105, %cst_44 [0] : vector<2x64xf32> to vector<64xf32>
    %107 = vector.shape_cast %106 : vector<64xf32> to vector<1x64xf32>
    %108 = tpu.reciprocal %107 {approx = true} : vector<1x64xf32> -> vector<1x64xf32>
    %109 = vector.broadcast %108 : vector<1x64xf32> to vector<2x64xf32>
    %110 = arith.mulf %105, %109 : vector<2x64xf32>
    %c0_45 = arith.constant 0 : index
    %c0_46 = arith.constant 0 : index
    %c0_47 = arith.constant 0 : index
    %111 = vector.load %arg9[%c0_45, %c0_46, %c0_47] : memref<1x2x64xf32, #tpu.memory_space<vmem>>, vector<1x2x64xf32>
    %112 = vector.shape_cast %111 : vector<1x2x64xf32> to vector<2x64xf32>
    %113 = vector.shape_cast %110 : vector<2x64xf32> to vector<1x2x64xf32>
    tpu.vector_store %arg9[%c0_45, %c0_46, %c0_47], %113 {strides = array<i32>} : memref<1x2x64xf32, #tpu.memory_space<vmem>>, vector<1x2x64xf32>,
    %c0_48 = arith.constant 0 : index
    %c0_49 = arith.constant 0 : index
    %c0_50 = arith.constant 0 : index
    %114 = vector.load %arg3[%c0_48, %c0_49, %c0_50] : memref<1x2x64xf32, #tpu.memory_space<vmem>>, vector<1x2x64xf32>
    %115 = vector.shape_cast %114 : vector<1x2x64xf32> to vector<2x64xf32>
    %116 = arith.addf %100, %115 : vector<2x64xf32>
    %cst_51 = arith.constant 2.000000e+00 : f32
    %117 = vector.broadcast %cst_51 : f32 to vector<2x64xf32>
    %118 = arith.mulf %116, %117 : vector<2x64xf32>
    %cst_52 = arith.constant dense<0xFF800000> : vector<64xf32>
    %119 = vector.multi_reduction <maximumf>, %118, %cst_52 [0] : vector<2x64xf32> to vector<64xf32>
    %120 = vector.shape_cast %119 : vector<64xf32> to vector<1x64xf32>
    %121 = vector.broadcast %120 : vector<1x64xf32> to vector<2x64xf32>
    %122 = arith.subf %118, %121 : vector<2x64xf32>
    %123 = math.exp %122 : vector<2x64xf32>
    %cst_53 = arith.constant dense<0.000000e+00> : vector<64xf32>
    %124 = vector.multi_reduction <add>, %123, %cst_53 [0] : vector<2x64xf32> to vector<64xf32>
    %125 = vector.shape_cast %124 : vector<64xf32> to vector<1x64xf32>
    %126 = tpu.reciprocal %125 {approx = true} : vector<1x64xf32> -> vector<1x64xf32>
    %127 = vector.broadcast %126 : vector<1x64xf32> to vector<2x64xf32>
    %128 = arith.mulf %123, %127 : vector<2x64xf32>
    %c0_54 = arith.constant 0 : index
    %c0_55 = arith.constant 0 : index
    %c0_56 = arith.constant 0 : index
    %129 = vector.load %arg8[%c0_54, %c0_55, %c0_56] : memref<1x2x64xf32, #tpu.memory_space<vmem>>, vector<1x2x64xf32>
    %130 = vector.shape_cast %129 : vector<1x2x64xf32> to vector<2x64xf32>
    %131 = vector.shape_cast %128 : vector<2x64xf32> to vector<1x2x64xf32>
    tpu.vector_store %arg8[%c0_54, %c0_55, %c0_56], %131 {strides = array<i32>} : memref<1x2x64xf32, #tpu.memory_space<vmem>>, vector<1x2x64xf32>,
    return
  }
  func.func @transform_0(%arg0: i32) -> (i32, i32, i32) {
    %c0_i32 = arith.constant 0 : i32
    %c0_i32_0 = arith.constant 0 : i32
    %c0_i32_1 = arith.constant 0 : i32
    return %arg0, %c0_i32, %c0_i32_0 : i32, i32, i32
  }
  func.func @transform_1(%arg0: i32) -> (i32, i32, i32) {
    %c0_i32 = arith.constant 0 : i32
    %c0_i32_0 = arith.constant 0 : i32
    %c0_i32_1 = arith.constant 0 : i32
    return %arg0, %c0_i32, %c0_i32_0 : i32, i32, i32
  }
  func.func @transform_2(%arg0: i32) -> (i32, i32, i32) {
    %c0_i32 = arith.constant 0 : i32
    %c0_i32_0 = arith.constant 0 : i32
    %c0_i32_1 = arith.constant 0 : i32
    return %arg0, %c0_i32, %c0_i32_0 : i32, i32, i32
  }
  func.func @transform_3(%arg0: i32) -> (i32, i32) {
    %c0_i32 = arith.constant 0 : i32
    %c0_i32_0 = arith.constant 0 : i32
    %c0_i32_1 = arith.constant 0 : i32
    return %c0_i32, %c0_i32_0 : i32, i32
  }
  func.func @transform_4(%arg0: i32) -> (i32, i32) {
    %c0_i32 = arith.constant 0 : i32
    %c0_i32_0 = arith.constant 0 : i32
    %c0_i32_1 = arith.constant 0 : i32
    return %c0_i32, %c0_i32_0 : i32, i32
  }
  func.func @transform_5(%arg0: i32) -> (i32, i32) {
    %c0_i32 = arith.constant 0 : i32
    %c0_i32_0 = arith.constant 0 : i32
    %c0_i32_1 = arith.constant 0 : i32
    return %c0_i32, %c0_i32_0 : i32, i32
  }
  func.func @transform_6(%arg0: i32) -> (i32, i32) {
    %c0_i32 = arith.constant 0 : i32
    %c0_i32_0 = arith.constant 0 : i32
    %c0_i32_1 = arith.constant 0 : i32
    return %c0_i32, %c0_i32_0 : i32, i32
  }
  func.func @transform_7(%arg0: i32) -> (i32, i32, i32) {
    %c0_i32 = arith.constant 0 : i32
    %c0_i32_0 = arith.constant 0 : i32
    %c0_i32_1 = arith.constant 0 : i32
    return %arg0, %c0_i32, %c0_i32_0 : i32, i32, i32
  }
  func.func @transform_8(%arg0: i32) -> (i32, i32, i32) {
    %c0_i32 = arith.constant 0 : i32
    %c0_i32_0 = arith.constant 0 : i32
    %c0_i32_1 = arith.constant 0 : i32
    return %arg0, %c0_i32, %c0_i32_0 : i32, i32, i32
  }
}

</mosaic_0001>

<bundles_post_ra>
// kernel: tpu_custom_call.1
= control target key start
LH: loop header
LB: loop body
LE: loop exit
PB: predicated region body
PF: predicated region fallthrough
CT: control target
= control target key end

     0   :  { %s1862_s0 = inlined_call_operand.vmem [shape: f32[2,32,8], index: 0, kind: input, shape index: {}]   ;;  %s1863_s1 = inlined_call_operand.vmem [shape: f32[2,32,8], index: 1, kind: input, shape index: {}]   ;;  %s1864_s2 = inlined_call_operand.vmem [shape: f32[2,2,64], index: 2, kind: input, shape index: {}]   ;;  %s1865_s3 = inlined_call_operand.vmem [shape: f32[32,32], index: 3, kind: input, shape index: {}]   ;;  %s1866_s4 = inlined_call_operand.vmem [shape: f32[32,1], index: 4, kind: input, shape index: {}]   ;;  %s1867_s5 = inlined_call_operand.vmem [shape: f32[2,32], index: 5, kind: input, shape index: {}]   ;;  %s1868_s6 = inlined_call_operand.vmem [shape: f32[2,1], index: 6, kind: input, shape index: {}]   ;;  %s1869_s7 = inlined_call_operand.hbm [shape: f32[2,2,64], index: 7, kind: output, shape index: {0}]   ;;  %s1870_s8 = inlined_call_operand.hbm [shape: f32[2,2,64], index: 8, kind: output, shape index: {1}]  }
   0x1   :  { %1871 = sst [smem:[#allocation9_spill]] %s1862_s0 }
   0x2   :  { %1872 = sst [smem:[#allocation10_spill]] %s1863_s1 }
   0x3   :  { %1873 = sst [smem:[#allocation11_spill]] %s1864_s2 }
   0x4   :  { %14 = vsyncpa [#allocation4], 0 }
   0x5   :  { %16 = vsyncpa [#allocation4 + $0x1], 0 }
   0x6   :  { %17 = vsyncpa [#allocation6], 0 }
   0x7   :  { %19 = vsyncpa [#allocation6 + $0x1], 0  ;;  %s1547_s27 = smov 0   ;;  %s1549_s28 = smov 0  }
   0x8   :  { %s1551_s29 = smov 0   ;;  %s1553_s30 = smov 0  }
   0x9 LB: > { %s1568_s9 = sadd.s32 4294967295, %s1485_s30   ;;  %s1155_s10 = sadd.s32 4294967294, %s1485_s30   ;;  %s1485_s30 = sphi %s1553_s30, %s1882_s30   ;;  %s1481_s29 = sphi %s1551_s29, %s1881_s29   ;;  %s1477_s28 = sphi %s1549_s28, %s1880_s28   ;;  %s1473_s27 = sphi %s1547_s27, %s1879_s27  }
   0xa   : > { %s1572_s11 = sadd.s32 1, %s1485_s30   ;;  %s194_s12 = sadd.s32 1, %s1481_s29 }
   0xb   : > { %s191_s13 = ssub.s32 %s1485_s30, %s1572_s11  ;;  %p204_p0 = scmp.ne.s32.totalorder %s1481_s29, %s1477_s28 }
   0xc   : > { %p192_p1 = scmp.eq.s32.totalorder %s191_s13, 0  ;;  %p205_p2 = scmp.eq.s32.totalorder %s1568_s9, 1 }
   0xd   : > { %p210_p3 = scmp.ne.s32.totalorder %s1477_s28, %s1473_s27  ;;  %p211_p4 = scmp.eq.s32.totalorder %s1155_s10, 1 }
   0xe   : > { %s1583_s14 = scalar_select %p192_p1, %s1481_s29, %s194_s12  }
   0xf   : > { %p1585_p5 = por %p205_p2, %p204_p0  ;;  %p1589_p6 = por %p211_p4, %p210_p3 }
  0x10   : > { %p1158_p7 = scmp.ge.s32.totalorder %s1485_s30, 1  ;;  %p290_p8 = scmp.lt.s32.totalorder %s1485_s30, 3 }
  0x12   : > { %p291_p9 = pnand %p1158_p7, %p290_p8 }
  0x13   : > { %p338_p10 = scmp.lt.s32.totalorder (!%p291_p9), %s1568_s9, 1  ;;  %s1876_s1 = sld [smem:[#allocation10_spill]] (!%p291_p9) }
  0x14   : > { %294 = sbr.rel (%p291_p9) target bundleno = 725 (0x2d5), region = 48  ;;  %s1877_s0 = sld [smem:[#allocation9_spill]] (!%p291_p9) }
  0x15   : > { %s1495_s25 = smov (!%p291_p9), 8   ;;  %s1496_s26 = smov (!%p291_p9), 32  }
  0x16   : > { %s1497_s10 = smov (!%p291_p9), 16   ;;  %s1498_s12 = smov (!%p291_p9), 24  }
  0x17   : > { %s1499_s13 = smov (!%p291_p9), 40   ;;  %s1501_s19 = smov (!%p291_p9), 56  }
  0x18   : > { %s1878_s2 = sld [smem:[#allocation11_spill]] (!%p291_p9)  ;;  %s1209_s20 = sshll.u32 (!%p291_p9), %s1568_s9, 1 }
  0x19   : > { %v1487_v0 = vmov 1   ;;  %s1597_s17 = scalar_select %p338_p10, %s1568_s9, 1  ;;  %v1488_v1 = vmov 2   ;;  %v1489_v4 = vmov 3   ;;  %v1490_v5 = vmov 4  }
  0x1a   : > { %1284 = vset.pattern.permute.xlu1 %v1487_v0  ;;  %1282 = vset.pattern.permute.xlu0 %v1487_v0  ;;  %v1491_v7 = vmov 5   ;;  %v1492_v8 = vmov 6   ;;  %v1493_v10 = vmov 7   ;;  %v1494_v11 = vmov 0  }
  0x1b   : > { %1286 = vset.pattern.permute.xlu2 %v1488_v1  ;;  %s1213_s18 = sshll.u32 %s1597_s17, 5 }
  0x1c   : > { %s1605_s21 = scalar_lea.vmem %s1876_s1, %s1213_s18  ;;  %s1626_s24 = scalar_lea.vmem %s1877_s0, %s1213_s18 }
  0x1d   : > { %v1608_v2 = vld [vmem:[%s1605_s21 + $0x18] sm:$0xff]  ;;  %v358_v3 = vld [vmem:[%s1605_s21 + $0x10] sm:$0xff]  ;;  %v357_v6 = vld [vmem:[%s1605_s21 + $0x8] sm:$0xff]  ;;  %s1500_s18 = smov 48  }
  0x1e   : > { %422 = vperm.xlu0 %1282, %v1608_v2   ;;  %418 = vperm.xlu1 %1284, %v358_v3   ;;  %v356_v9 = vld [vmem:[%s1605_s21] sm:$0xff]  ;;  %v1629_v14 = vld [vmem:[%s1626_s24 + $0x10] sm:$0xff]  ;;  %v1632_v15 = vld [vmem:[%s1626_s24 + $0x18] sm:$0xff] }
  0x1f   : > { %479 = vperm.xlu2 %1286, %v358_v3   ;;  %v1646_v41 = vld [vmem:[%s1626_s24 + $0x8] sm:$0xff]  ;;  %v1655_v58 = vld [vmem:[%s1626_s24] sm:$0xff]  ;;  %s1034_s24 = scalar_lea.hbm %s1870_s8, %s1209_s20 }
  0x26   : > { %1283 = vset.pattern.permute.xlu0 %v1488_v1  ;;  %1285 = vset.pattern.permute.xlu1 %v1489_v4 }
  0x27   : > { %483 = vperm.xlu0 %1283, %v1608_v2   ;;  %544 = vperm.xlu1 %1285, %v1608_v2  }
  0x28   : > { %1287 = vset.pattern.permute.xlu2 %v1490_v5 }
  0x29   : > { %605 = vperm.xlu2 %1287, %v1608_v2  }
  0x2f   : > { %1288 = vset.pattern.permute.xlu1 %v1487_v0  ;;  %1290 = vset.pattern.permute.xlu0 %v1491_v7 }
  0x30   : > { %414 = vperm.xlu1 %1288, %v357_v6   ;;  %666 = vperm.xlu0 %1290, %v1608_v2  }
  0x31   : > { %1289 = vset.pattern.permute.xlu2 %v1489_v4 }
  0x32   : > { %540 = vperm.xlu2 %1289, %v358_v3  }
  0x38   : > { %1291 = vset.pattern.permute.xlu1 %v1488_v1  ;;  %1295 = vset.pattern.permute.xlu0 %v1489_v4 }
  0x39   : > { %475 = vperm.xlu1 %1291, %v357_v6   ;;  %536 = vperm.xlu0 %1295, %v357_v6  }
  0x3a   : > { %1292 = vset.pattern.permute.xlu2 %v1490_v5 }
  0x3b   : > { %601 = vperm.xlu2 %1292, %v358_v3  }
  0x41   : > { %1293 = vset.pattern.permute.xlu1 %v1492_v8  ;;  %1300 = vset.pattern.permute.xlu0 %v1492_v8 }
  0x42   : > { %727 = vperm.xlu1 %1293, %v1608_v2   ;;  %723 = vperm.xlu0 %1300, %v358_v3  }
  0x43   : > { %1294 = vset.pattern.permute.xlu2 %v1487_v0 }
  0x44   : > { %410 = vperm.xlu2 %1294, %v356_v9  }
  0x4a   : > { %1296 = vset.pattern.permute.xlu1 %v1491_v7  ;;  %719 = vperm.xlu0 %1300, %v357_v6  }
  0x4b   : > { %662 = vperm.xlu1 %1296, %v358_v3  }
  0x4c   : > { %1297 = vset.pattern.permute.xlu2 %v1493_v10 }
  0x4d   : > { %788 = vperm.xlu2 %1297, %v1608_v2  }
  0x52   : > { %715 = vperm.xlu0 %1300, %v356_v9  }
  0x53   : > { %1298 = vset.pattern.permute.xlu1 %v1488_v1 }
  0x54   : > { %471 = vperm.xlu1 %1298, %v356_v9  }
  0x55   : > { %1299 = vset.pattern.permute.xlu2 %v1490_v5 }
  0x56   : > { %597 = vperm.xlu2 %1299, %v357_v6  }
  0x5a   : > { %1309 = vset.pattern.permute.xlu0 %v1494_v11 }
  0x5b   : > { %372 = vperm.xlu0 %1309, %v358_v3  }
  0x5c   : > { %1301 = vset.pattern.permute.xlu1 %v1489_v4 }
  0x5d   : > { %532 = vperm.xlu1 %1301, %v356_v9  }
  0x5e   : > { %1302 = vset.pattern.permute.xlu2 %v1491_v7 }
  0x5f   : > { %658 = vperm.xlu2 %1302, %v357_v6  }
  0x65   : > { %1303 = vset.pattern.permute.xlu1 %v1493_v10 }
  0x66   : > { %784 = vperm.xlu1 %1303, %v358_v3  }
  0x67   : > { %1304 = vset.pattern.permute.xlu2 %v1490_v5 }
  0x68   : > { %593 = vperm.xlu2 %1304, %v356_v9  }
  0x6e   : > { %1305 = vset.pattern.permute.xlu1 %v1491_v7 }
  0x6f   : > { %654 = vperm.xlu1 %1305, %v356_v9  }
  0x70   : > { %1306 = vset.pattern.permute.xlu2 %v1493_v10 }
  0x71   : > { %780 = vperm.xlu2 %1306, %v357_v6  }
  0x77   : > { %1307 = vset.pattern.permute.xlu1 %v1493_v10 }
  0x78   : > { %776 = vperm.xlu1 %1307, %v356_v9  }
  0x79   : > { %1308 = vset.pattern.permute.xlu2 %v1494_v11  ;;  %v480_v12 = vpop.permute.xlu2 %479 }
  0x7a   : > { %377 = vperm.xlu2 %1308, %v1608_v2   ;;  %v1638_v28 = vadd.f32 %v480_v12, %v1629_v14 }
  0x7c   : > { %v498_v38 = vmul.f32 1.442695, %v1638_v28  ;;  %vm492_vm5 = vcmp.gt.f32.partialorder %v1638_v28, 0.0 }
  0x80   : > { %1310 = vset.pattern.permute.xlu1 %v1494_v11 }
  0x81   : > { %367 = vperm.xlu1 %1310, %v357_v6  }
  0x82   : > { %362 = vperm.xlu2 %1308, %v356_v9  }
  0x83   : > { %v606_v13 = vpop.permute.xlu2 %605 }
  0x84   : > { %v611_v19 = vadd.f32 %v606_v13, %v1632_v15 }
  0x86   : > { %v622_v24 = vmul.f32 1.442695, %v611_v19  ;;  %vm615_vm2 = vcmp.gt.f32.partialorder %v611_v19, 0.0 }
  0x8c   : > { %v541_v16 = vpop.permute.xlu2 %540 }
  0x8d   : > { %v1649_v43 = vadd.f32 %v541_v16, %v1629_v14 }
  0x8f   : > { %v559_v55 = vmul.f32 1.442695, %v1649_v43  ;;  %vm553_vm8 = vcmp.gt.f32.partialorder %v1649_v43, 0.0 }
  0x90   : > { %v423_v17 = vpop.permute.xlu0 %422  ;;  %v419_v18 = vpop.permute.xlu1 %418 }
  0x91   : > { %v428_v20 = vadd.f32 %v423_v17, %v1632_v15  ;;  %v427_v21 = vadd.f32 %v419_v18, %v1629_v14 }
  0x93   : > { %v439_v22 = vmul.f32 1.442695, %v428_v20  ;;  %v437_v23 = vmul.f32 1.442695, %v427_v21  ;;  %vm432_vm0 = vcmp.gt.f32.partialorder %v428_v20, 0.0  ;;  %vm431_vm1 = vcmp.gt.f32.partialorder %v427_v21, 0.0 }
  0x95   : > { %1311 = vpow2.f32 %v439_v22  ;;  %v602_v25 = vpop.permute.xlu2 %601 }
  0x96   : > { %1313 = vpow2.f32 %v437_v23  ;;  %v1661_v61 = vadd.f32 %v602_v25, %v1629_v14 }
  0x97   : > { %1315 = vpow2.f32 %v622_v24 }
  0x98   : > { %v620_v3 = vmul.f32 1.442695, %v1661_v61  ;;  %vm614_vm10 = vcmp.gt.f32.partialorder %v1661_v61, 0.0 }
  0x99   : > { %v484_v26 = vpop.permute.xlu0 %483  ;;  %v545_v27 = vpop.permute.xlu1 %544 }
  0x9a   : > { %v489_v29 = vadd.f32 %v484_v26, %v1632_v15  ;;  %v550_v30 = vadd.f32 %v545_v27, %v1632_v15 }
  0x9b   : > { %v1312_v31 = vpop.eup %1311 }
  0x9c   : > { %v1314_v32 = vpop.eup %1313  ;;  %v500_v33 = vmul.f32 1.442695, %v489_v29  ;;  %v561_v34 = vmul.f32 1.442695, %v550_v30  ;;  %v1173_v35 = vadd.f32 -1.0, %v1312_v31  ;;  %vm493_vm3 = vcmp.gt.f32.partialorder %v489_v29, 0.0 }
  0x9d   : > { %v1172_v36 = vadd.f32 -1.0, %v1314_v32  ;;  %v1316_v37 = vpop.eup %1315  ;;  %vm554_vm4 = vcmp.gt.f32.partialorder %v550_v30, 0.0 }
  0x9e   : > { %1317 = vpow2.f32 %v500_v33  ;;  %v448_v39 = vsel %vm432_vm0, %v428_v20, %v1173_v35  ;;  %v1185_v42 = vadd.f32 -1.0, %v1316_v37  ;;  %v411_v48 = vpop.permute.xlu2 %410 }
  0x9f   : > { %1319 = vpow2.f32 %v561_v34  ;;  %459 = vrot.lane.b32.xlu1 %v448_v39, %s1495_s25  ;;  %v447_v40 = vsel %vm431_vm1, %v427_v21, %v1172_v36  ;;  %v1664_v62 = vadd.f32 %v411_v48, %v1655_v58 }
  0xa0   : > { %457 = vrot.lane.b32.xlu0 %v447_v40, %s1495_s25  ;;  %1321 = vpow2.f32 %v498_v38  ;;  %v631_v53 = vsel %vm615_vm2, %v611_v19, %v1185_v42 }
  0xa1   : > { %v433_v9 = vmul.f32 1.442695, %v1664_v62  ;;  %vm429_vm11 = vcmp.gt.f32.partialorder %v1664_v62, 0.0 }
  0xa2   : > { %v415_v44 = vpop.permute.xlu1 %414  ;;  %v667_v45 = vpop.permute.xlu0 %666 }
  0xa3   : > { %v426_v46 = vadd.f32 %v415_v44, %v1646_v41  ;;  %v672_v47 = vadd.f32 %v667_v45, %v1632_v15 }
  0xa4   : > { %v1318_v49 = vpop.eup %1317 }
  0xa5   : > { %v1320_v50 = vpop.eup %1319  ;;  %v435_v51 = vmul.f32 1.442695, %v426_v46  ;;  %v683_v52 = vmul.f32 1.442695, %v672_v47  ;;  %v1177_v54 = vadd.f32 -1.0, %v1318_v49  ;;  %vm676_vm6 = vcmp.gt.f32.partialorder %v672_v47, 0.0 }
  0xa6   : > { %v1181_v56 = vadd.f32 -1.0, %v1320_v50  ;;  %v1322_v59 = vpop.eup %1321  ;;  %vm430_vm7 = vcmp.gt.f32.partialorder %v426_v46, 0.0 }
  0xa7   : > { %1323 = vpow2.f32 %v435_v51  ;;  %v509_v57 = vsel %vm493_vm3, %v489_v29, %v1177_v54  ;;  %v1176_v0 = vadd.f32 -1.0, %v1322_v59  ;;  %v789_v4 = vpop.permute.xlu2 %788 }
  0xa8   : > { %1325 = vpow2.f32 %v683_v52  ;;  %642 = vrot.lane.b32.xlu0 %v631_v53, %s1496_s26  ;;  %520 = vrot.lane.b32.xlu2 %v509_v57, %s1497_s10  ;;  %v570_v60 = vsel %vm554_vm4, %v550_v30, %v1181_v56  ;;  %v794_v18 = vadd.f32 %v789_v4, %v1632_v15 }
  0xa9   : > { %581 = vrot.lane.b32.xlu1 %v570_v60, %s1498_s12  ;;  %1327 = vpow2.f32 %v559_v55  ;;  %v508_v10 = vsel %vm492_vm5, %v1638_v28, %v1176_v0 }
  0xaa   : > { %v805_v24 = vmul.f32 1.442695, %v794_v18  ;;  %vm798_vm14 = vcmp.gt.f32.partialorder %v794_v18, 0.0 }
  0xab   : > { %v476_v63 = vpop.permute.xlu1 %475  ;;  %v537_v7 = vpop.permute.xlu0 %536 }
  0xac   : > { %v487_v1 = vadd.f32 %v476_v63, %v1646_v41  ;;  %v1672_v13 = vadd.f32 %v537_v7, %v1646_v41 }
  0xad   : > { %v1324_v2 = vpop.eup %1323 }
  0xae   : > { %v1326_v5 = vpop.eup %1325  ;;  %v496_v6 = vmul.f32 1.442695, %v487_v1  ;;  %v1171_v8 = vadd.f32 -1.0, %v1324_v2  ;;  %v557_v20 = vmul.f32 1.442695, %v1672_v13  ;;  %vm491_vm9 = vcmp.gt.f32.partialorder %v487_v1, 0.0 }
  0xaf   : > { %v1189_v11 = vadd.f32 -1.0, %v1326_v5  ;;  %v1328_v12 = vpop.eup %1327  ;;  %vm552_vm13 = vcmp.gt.f32.partialorder %v1672_v13, 0.0 }
  0xb0   : > { %1329 = vpow2.f32 %v496_v6  ;;  %518 = vrot.lane.b32.xlu2 %v508_v10, %s1497_s10  ;;  %v446_v16 = vsel %vm430_vm7, %v426_v46, %v1171_v8  ;;  %v1180_v19 = vadd.f32 -1.0, %v1328_v12  ;;  %v598_v29 = vpop.permute.xlu2 %597 }
  0xb1   : > { %1331 = vpow2.f32 %v620_v3  ;;  %455 = vrot.lane.b32.xlu1 %v446_v16, %s1495_s25  ;;  %v692_v17 = vsel %vm676_vm6, %v672_v47, %v1189_v11  ;;  %v609_v36 = vadd.f32 %v598_v29, %v1646_v41 }
  0xb2   : > { %1333 = vpow2.f32 %v433_v9  ;;  %703 = vrot.lane.b32.xlu0 %v692_v17, %s1499_s13  ;;  %v569_v27 = vsel %vm553_vm8, %v1649_v43, %v1180_v19 }
  0xb3   : > { %1335 = vpow2.f32 %v557_v20  ;;  %v618_v48 = vmul.f32 1.442695, %v609_v36  ;;  %vm613_vm1 = vcmp.gt.f32.partialorder %v609_v36, 0.0 }
  0xb4   : > { %v728_v21 = vpop.permute.xlu1 %727  ;;  %v724_v31 = vpop.permute.xlu0 %723 }
  0xb5   : > { %v733_v22 = vadd.f32 %v728_v21, %v1632_v15  ;;  %v1684_v32 = vadd.f32 %v724_v31, %v1629_v14 }
  0xb6   : > { %v1330_v23 = vpop.eup %1329 }
  0xb7   : > { %v1332_v25 = vpop.eup %1331  ;;  %v744_v26 = vmul.f32 1.442695, %v733_v22  ;;  %v1175_v28 = vadd.f32 -1.0, %v1330_v23  ;;  %v742_v37 = vmul.f32 1.442695, %v1684_v32  ;;  %vm737_vm12 = vcmp.gt.f32.partialorder %v733_v22, 0.0 }
  0xb8   : > { %v1334_v30 = vpop.eup %1333  ;;  %579 = vrot.lane.b32.xlu2 %v569_v27, %s1498_s12  ;;  %v1184_v34 = vadd.f32 -1.0, %v1332_v25  ;;  %vm736_vm0 = vcmp.gt.f32.partialorder %v1684_v32, 0.0 }
  0xb9   : > { %1337 = vpow2.f32 %v744_v26  ;;  %v507_v33 = vsel %vm491_vm9, %v487_v1, %v1175_v28  ;;  %v1170_v35 = vadd.f32 -1.0, %v1334_v30  ;;  %v1336_v39 = vpop.eup %1335  ;;  %v659_v49 = vpop.permute.xlu2 %658 }
  0xba   : > { %516 = vrot.lane.b32.xlu1 %v507_v33, %s1497_s10  ;;  %1339 = vpow2.f32 %v805_v24  ;;  %v630_v43 = vsel %vm614_vm10, %v1661_v61, %v1184_v34  ;;  %v1179_v50 = vadd.f32 -1.0, %v1336_v39  ;;  %v670_v53 = vadd.f32 %v659_v49, %v1646_v41 }
  0xbb   : > { %v445_v44 = vsel %vm429_vm11, %v1664_v62, %v1170_v35  ;;  %1341 = vpow2.f32 %v742_v37 }
  0xbc   : > { %v568_v54 = vsel %vm552_vm13, %v1672_v13, %v1179_v50  ;;  %v720_v57 = vpop.permute.xlu0 %719  ;;  %v679_v62 = vmul.f32 1.442695, %v670_v53  ;;  %vm674_vm3 = vcmp.gt.f32.partialorder %v670_v53, 0.0  ;;  %vm404_vm13 = vcmask 64512  }
  0xbd   : > { %v663_v38 = vpop.permute.xlu1 %662  ;;  %v731_v5 = vadd.f32 %v720_v57, %v1646_v41 }
  0xbe   : > { %v671_v40 = vadd.f32 %v663_v38, %v1629_v14 }
  0xbf   : > { %v1338_v42 = vpop.eup %1337  ;;  %v740_v12 = vmul.f32 1.442695, %v731_v5  ;;  %vm735_vm5 = vcmp.gt.f32.partialorder %v731_v5, 0.0 }
  0xc0   : > { %v1340_v45 = vpop.eup %1339  ;;  %v681_v46 = vmul.f32 1.442695, %v671_v40  ;;  %640 = vrot.lane.b32.xlu2 %v630_v43, %s1496_s26  ;;  %v1193_v47 = vadd.f32 -1.0, %v1338_v42  ;;  %vm675_vm15 = vcmp.gt.f32.partialorder %v671_v40, 0.0 }
  0xc1   : > { %v1197_v52 = vadd.f32 -1.0, %v1340_v45  ;;  %v1342_v56 = vpop.eup %1341 }
  0xc2   : > { %1343 = vpow2.f32 %v681_v46  ;;  %453 = vrot.lane.b32.xlu1 %v445_v44, %s1495_s25  ;;  %v753_v51 = vsel %vm737_vm12, %v733_v22, %v1193_v47  ;;  %v594_v1 = vpop.permute.xlu2 %593  ;;  %v1192_v4 = vadd.f32 -1.0, %v1342_v56 }
  0xc3   : > { %764 = vrot.lane.b32.xlu0 %v753_v51, %s1500_s18  ;;  %1345 = vpow2.f32 %v618_v48  ;;  %v814_v60 = vsel %vm798_vm14, %v794_v18, %v1197_v52  ;;  %v608_v7 = vadd.f32 %v594_v1, %v1655_v58 }
  0xc4   : > { %v752_v9 = vsel %vm736_vm0, %v1684_v32, %v1192_v4  ;;  %v716_v13 = vpop.permute.xlu0 %715 }
  0xc5   : > { %v616_v20 = vmul.f32 1.442695, %v608_v7  ;;  %v1711_v22 = vadd.f32 %v716_v13, %v1655_v58  ;;  %vm612_vm6 = vcmp.gt.f32.partialorder %v608_v7, 0.0 }
  0xc6   : > { %v472_v55 = vpop.permute.xlu1 %471 }
  0xc7   : > { %v486_v59 = vadd.f32 %v472_v55, %v1655_v58  ;;  %v738_v26 = vmul.f32 1.442695, %v1711_v22  ;;  %vm734_vm8 = vcmp.gt.f32.partialorder %v1711_v22, 0.0 }
  0xc8   : > { %v1344_v61 = vpop.eup %1343  ;;  %577 = vrot.lane.b32.xlu2 %v568_v54, %s1498_s12 }
  0xc9   : > { %v494_v63 = vmul.f32 1.442695, %v486_v59  ;;  %v1188_v0 = vadd.f32 -1.0, %v1344_v61  ;;  %v1346_v2 = vpop.eup %1345  ;;  %vm490_vm2 = vcmp.gt.f32.partialorder %v486_v59, 0.0 }
  0xca   : > { %825 = vrot.lane.b32.xlu1 %v814_v60, %s1501_s19  ;;  %v1183_v6 = vadd.f32 -1.0, %v1346_v2 }
  0xcb   : > { %1347 = vpow2.f32 %v494_v63  ;;  %v691_v3 = vsel %vm675_vm15, %v671_v40, %v1188_v0  ;;  %v781_v21 = vpop.permute.xlu2 %780 }
  0xcc   : > { %701 = vrot.lane.b32.xlu0 %v691_v3, %s1499_s13  ;;  %1349 = vpow2.f32 %v679_v62  ;;  %v629_v16 = vsel %vm613_vm1, %v609_v36, %v1183_v6  ;;  %v792_v25 = vadd.f32 %v781_v21, %v1646_v41  ;;  %vm465_vm1 = vcmask 130112  }
  0xcd   : > { %v373_v44 = vpop.permute.xlu0 %372 }
  0xce   : > { %v801_v31 = vmul.f32 1.442695, %v792_v25  ;;  %v382_v47 = vadd.f32 %v373_v44, %v1629_v14  ;;  %vm796_vm9 = vcmp.gt.f32.partialorder %v792_v25, 0.0 }
  0xcf   : > { %v533_v8 = vpop.permute.xlu1 %532 }
  0xd0   : > { %v547_v10 = vadd.f32 %v533_v8, %v1655_v58  ;;  %vm386_vm12 = vcmp.gt.f32.partialorder %v382_v47, 0.0 }
  0xd1   : > { %v1348_v11 = vpop.eup %1347 }
  0xd2   : > { %v1350_v17 = vpop.eup %1349  ;;  %v555_v18 = vmul.f32 1.442695, %v547_v10  ;;  %v1174_v19 = vadd.f32 -1.0, %v1348_v11  ;;  %762 = vrot.lane.b32.xlu1 %v752_v9, %s1500_s18  ;;  %vm551_vm4 = vcmp.gt.f32.partialorder %v547_v10, 0.0 }
  0xd3   : > { %v1187_v24 = vadd.f32 -1.0, %v1350_v17 }
  0xd4   : > { %1351 = vpow2.f32 %v555_v18  ;;  %638 = vrot.lane.b32.xlu0 %v629_v16, %s1496_s26  ;;  %v506_v23 = vsel %vm490_vm2, %v486_v59, %v1174_v19  ;;  %v378_v35 = vpop.permute.xlu2 %377  ;;  %vm526_vm2 = vcmask 195712  }
  0xd5   : > { %1353 = vpow2.f32 %v740_v12  ;;  %514 = vrot.lane.b32.xlu2 %v506_v23, %s1497_s10  ;;  %v690_v29 = vsel %vm674_vm3, %v670_v53, %v1187_v24  ;;  %v383_v37 = vadd.f32 %v378_v35, %v1632_v15  ;;  %v392_v53 = vmul.f32 1.442695, %v382_v47  ;;  %v845_v23 = vld [vmem:[%s1866_s4 + $0x8] sm:$0xff]  ;;  %s1038_s10 = sshll.u32 %s1034_s24, 4  ;;  %s1039_s10 = int_to_ptr.hbm [resolvable:$true] %s1038_s10 }
  0xd6   : > { %1355 = vpow2.f32 %v616_v20  ;;  %v931_v20 = vld [vmem:[%s1868_s6] sm:$0x3]  ;;  %vm587_vm3 = vcmask 261312   ;;  %s1405_s23 = sshra.s32 %s1039_s10, 4  ;;  %s1406_s23 = int_to_ptr.hbm [resolvable:$true] %s1405_s23 }
  0xd7   : > { %1357 = vpow2.f32 %v738_v26  ;;  %v394_v42 = vmul.f32 1.442695, %v383_v37  ;;  %vm387_vm10 = vcmp.gt.f32.partialorder %v383_v37, 0.0  ;;  %s1407_s1 = scalar_lea.hbm %s1406_s23, 2  ;;  %p1412_p0 = scmp.lt.s32.totalorder %s1406_s23, %s1870_s8 }
  0xd8   : > { %v785_v27 = vpop.permute.xlu1 %784  ;;  %p1408_p11 = scmp.ne.s32.totalorder %s1406_s23, %s1407_s1 }
  0xd9   : > { %v793_v28 = vadd.f32 %v785_v27, %v1629_v14 }
  0xda   : > { %v1352_v30 = vpop.eup %1351  ;;  %p1409_p12 = pnand %p1408_p11, %p1585_p5 }
  0xdb   : > { %v1354_v32 = vpop.eup %1353  ;;  %v803_v33 = vmul.f32 1.442695, %v793_v28  ;;  %v1178_v34 = vadd.f32 -1.0, %v1352_v30  ;;  %vm797_vm7 = vcmp.gt.f32.partialorder %v793_v28, 0.0 }
  0xdc   : > { %v1356_v36 = vpop.eup %1355  ;;  %699 = vrot.lane.b32.xlu0 %v690_v29, %s1499_s13  ;;  %v1191_v39 = vadd.f32 -1.0, %v1354_v32  ;;  %v363_v14 = vpop.permute.xlu2 %362  ;;  %p1410_p13 = pneg %p1409_p12 }
  0xdd   : > { %1359 = vpow2.f32 %v803_v33  ;;  %v567_v38 = vsel %vm551_vm4, %v547_v10, %v1178_v34  ;;  %v1182_v40 = vadd.f32 -1.0, %v1356_v36  ;;  %v1358_v45 = vpop.eup %1357  ;;  %v380_v60 = vadd.f32 %v363_v14, %v1655_v58  ;;  %v847_v10 = vld [vmem:[%s1866_s4 + $0x18] sm:$0xff] }
  0xde   : > { %575 = vrot.lane.b32.xlu2 %v567_v38, %s1498_s12  ;;  %1361 = vpow2.f32 %v801_v31  ;;  %v751_v49 = vsel %vm735_vm5, %v731_v5, %v1191_v39  ;;  %v1190_v55 = vadd.f32 -1.0, %v1358_v45  ;;  %vm648_vm4 = vcmask 326912   ;;  %s1165_s12 = sshll.u32 %s1597_s17, 1  ;;  %s1811_s17 = sand.u32 1, %s1477_s28  }
  0xdf   : > { %v628_v15 = vsel %vm612_vm6, %v608_v7, %v1182_v40  ;;  %1363 = vpow2.f32 %v394_v42  ;;  %v388_v5 = vmul.f32 1.442695, %v380_v60  ;;  %vm384_vm15 = vcmp.gt.f32.partialorder %v380_v60, 0.0  ;;  %s1159_s21 = sshll.u32 %s1811_s17, 1  ;;  %s1010_s22 = scalar_lea.sflag [#allocation6], %s1811_s17 }
  0xe0   : > { %v750_v62 = vsel %vm734_vm8, %v1711_v22, %v1190_v55  ;;  %v844_v22 = vld [vmem:[%s1866_s4] sm:$0xff]  ;;  %vm709_vm5 = vcmask 392512   ;;  %vm770_vm6 = vcmask 458112   ;;  %vm868_vm8 = vcmask 261120   ;;  %s337_s25 = scalar_lea.vmem [#allocation5], %s1159_s21  ;;  %s330_s9 = scalar_lea.vmem [#allocation3], %s1159_s21 }
  0xe1   : > { %v655_v43 = vpop.permute.xlu1 %654 }
  0xe2   : > { %v669_v46 = vadd.f32 %v655_v43, %v1655_v58 }
  0xe3   : > { %v1360_v48 = vpop.eup %1359 }
  0xe4   : > { %v1362_v50 = vpop.eup %1361  ;;  %v677_v51 = vmul.f32 1.442695, %v669_v46  ;;  %760 = vrot.lane.b32.xlu0 %v751_v49, %s1500_s18  ;;  %v1196_v52 = vadd.f32 -1.0, %v1360_v48  ;;  %vm673_vm11 = vcmp.gt.f32.partialorder %v669_v46, 0.0 }
  0xe5   : > { %v1195_v56 = vadd.f32 -1.0, %v1362_v50  ;;  %v1364_v57 = vpop.eup %1363 }
  0xe6   : > { %1365 = vpow2.f32 %v677_v51  ;;  %636 = vrot.lane.b32.xlu2 %v628_v15, %s1496_s26  ;;  %v813_v54 = vsel %vm797_vm7, %v793_v28, %v1196_v52  ;;  %v1169_v4 = vadd.f32 -1.0, %v1364_v57  ;;  %vm831_vm7 = vcmask 523712   ;;  %v840_v57 = vld [vmem:[%s1865_s3] sm:$0xff]  ;;  %s1036_s26 = sshll.u32 %s337_s25, 4  ;;  %s1037_s26 = int_to_ptr.vmem [resolvable:$true] %s1036_s26 }
  0xe7   : > { %823 = vrot.lane.b32.xlu1 %v813_v54, %s1501_s19  ;;  %1367 = vpow2.f32 %v392_v53  ;;  %v812_v63 = vsel %vm796_vm9, %v792_v25, %v1195_v56 }
  0xe8   : > { %v403_v8 = vsel %vm387_vm10, %v383_v37, %v1169_v4 }
  0xe9   : > { %408 = vst.msk [vmem:[#allocation2 + $0x18] sm:$0xff] %vm404_vm13, %v403_v8 }
  0xea   : > { %v777_v59 = vpop.permute.xlu1 %776 }
  0xeb   : > { %v791_v61 = vadd.f32 %v777_v59, %v1655_v58  ;;  %v846_v58 = vld [vmem:[%s1866_s4 + $0x10] sm:$0xff] }
  0xec   : > { %v1366_v0 = vpop.eup %1365  ;;  %758 = vrot.lane.b32.xlu0 %v750_v62, %s1500_s18  ;;  %v843_v62 = vld [vmem:[%s1865_s3 + $0x18] sm:$0xff]  ;;  %s1020_s18 = scalar_lea.hbm %s1869_s7, %s1209_s20 }
  0xed   : > { %v1368_v1 = vpop.eup %1367  ;;  %v799_v2 = vmul.f32 1.442695, %v791_v61  ;;  %v1186_v3 = vadd.f32 -1.0, %v1366_v0  ;;  %vm795_vm14 = vcmp.gt.f32.partialorder %v791_v61, 0.0  ;;  %s1024_s0 = sshll.u32 %s1020_s18, 4  ;;  %s1025_s0 = int_to_ptr.hbm [resolvable:$true] %s1024_s0 }
  0xee   : > { %821 = vrot.lane.b32.xlu2 %v812_v63, %s1501_s19  ;;  %v1168_v6 = vadd.f32 -1.0, %v1368_v1 }
  0xef   : > { %1369 = vpow2.f32 %v799_v2  ;;  %v689_v7 = vsel %vm673_vm11, %v669_v46, %v1186_v3 }
  0xf0   : > { %697 = vrot.lane.b32.xlu1 %v689_v7, %s1499_s13  ;;  %v402_v9 = vsel %vm386_vm12, %v382_v47, %v1168_v6  ;;  %1371 = vpow2.f32 %v388_v5 }
  0xf1   : > { %407 = vst.msk [vmem:[#allocation2 + $0x10] sm:$0xff] %vm404_vm13, %v402_v9 }
  0xf3   : > { %v368_v11 = vpop.permute.xlu1 %367 }
  0xf4   : > { %860 = vperm.xlu0 %1309, %v846_v58   ;;  %v381_v12 = vadd.f32 %v368_v11, %v1646_v41 }
  0xf5   : > { %v1370_v13 = vpop.eup %1369 }
  0xf6   : > { %865 = vperm.xlu2 %1308, %v847_v10   ;;  %v1194_v16 = vadd.f32 -1.0, %v1370_v13  ;;  %v390_v17 = vmul.f32 1.442695, %v381_v12  ;;  %v1372_v18 = vpop.eup %1371  ;;  %vm385_vm0 = vcmp.gt.f32.partialorder %v381_v12, 0.0 }
  0xf7   : > { %v1166_v21 = vadd.f32 -1.0, %v1372_v18 }
  0xf8   : > { %v811_v19 = vsel %vm795_vm14, %v791_v61, %v1194_v16  ;;  %1373 = vpow2.f32 %v390_v17  ;;  %v842_v61 = vld [vmem:[%s1865_s3 + $0x10] sm:$0xff] }
  0xf9   : > { %819 = vrot.lane.b32.xlu1 %v811_v19, %s1501_s19  ;;  %v400_v25 = vsel %vm384_vm15, %v380_v60, %v1166_v21  ;;  %v841_v60 = vld [vmem:[%s1865_s3 + $0x8] sm:$0xff]  ;;  %s351_s19 = scalar_lea.vmem %s1878_s2, %s1165_s12  ;;  %s1411_s12 = scalar_lea.hbm %s1870_s8, 4 }
  0xfa   : > { %405 = vst.msk [vmem:[#allocation2] sm:$0xff] %vm404_vm13, %v400_v25  ;;  %p1413_p1 = scmp.lt.s32.totalorder %s1411_s12, %s1407_s1 }
  0xfc   : > { %934 = vperm.xlu0 %1309, %v931_v20   ;;  %p1414_p2 = por %p1413_p1, %p1412_p0 }
  0xfe   : > { %v1374_v41 = vpop.eup %1373  ;;  %850 = vperm.xlu2 %1308, %v844_v22   ;;  %p1415_p3 = pnand %p1414_p2, %p1410_p13 }
  0xff   : > { %v1167_v24 = vadd.f32 -1.0, %v1374_v41 }
 0x101   : > { %855 = vperm.xlu1 %1310, %v845_v23   ;;  %v401_v26 = vsel %vm385_vm0, %v381_v12, %v1167_v24 }
 0x102   : > { %v521_v27 = vpop.permute.xlu2 %520  ;;  %406 = vst.msk [vmem:[#allocation2 + $0x8] sm:$0xff] %vm404_vm13, %v401_v26  ;;  %v930_v26 = vld [vmem:[%s1867_s5] sm:$0x3]  ;;  %vm960_vm13 = vcmask 517120  }
 0x10a   : > { %v519_v28 = vpop.permute.xlu2 %518 }
 0x111   : > { %v460_v29 = vpop.permute.xlu1 %459 }
 0x112   : > { %469 = vst.msk [vmem:[#allocation2 + $0x18] sm:$0xff] %vm465_vm1, %v460_v29  ;;  %v458_v30 = vpop.permute.xlu0 %457  ;;  %v580_v31 = vpop.permute.xlu2 %579 }
 0x113   : > { %468 = vst.msk [vmem:[#allocation2 + $0x10] sm:$0xff] %vm465_vm1, %v458_v30  ;;  %v981_v30 = vld [vmem:[%s351_s19] sm:$0x3]  ;;  %s1022_s19 = sshll.u32 %s330_s9, 4  ;;  %s1023_s19 = int_to_ptr.vmem [resolvable:$true] %s1022_s19 }
 0x114   : > { %529 = vst.msk [vmem:[#allocation2 + $0x10] sm:$0xff] %vm526_vm2, %v519_v28 }
 0x115   : > { %590 = vst.msk [vmem:[#allocation2 + $0x10] sm:$0xff] %vm587_vm3, %v580_v31 }
 0x116   : > { %530 = vst.msk [vmem:[#allocation2 + $0x18] sm:$0xff] %vm526_vm2, %v521_v27 }
 0x11a   : > { %v641_v32 = vpop.permute.xlu2 %640  ;;  %v643_v34 = vpop.permute.xlu0 %642 }
 0x11b   : > { %v582_v33 = vpop.permute.xlu1 %581  ;;  %651 = vst.msk [vmem:[#allocation2 + $0x10] sm:$0xff] %vm648_vm4, %v641_v32 }
 0x11c   : > { %591 = vst.msk [vmem:[#allocation2 + $0x18] sm:$0xff] %vm587_vm3, %v582_v33 }
 0x11d   : > { %652 = vst.msk [vmem:[#allocation2 + $0x18] sm:$0xff] %vm648_vm4, %v643_v34 }
 0x122   : > { %v578_v37 = vpop.permute.xlu2 %577 }
 0x123   : > { %v456_v35 = vpop.permute.xlu1 %455 }
 0x124   : > { %467 = vst.msk [vmem:[#allocation2 + $0x8] sm:$0xff] %vm465_vm1, %v456_v35  ;;  %v704_v36 = vpop.permute.xlu0 %703 }
 0x125   : > { %713 = vst.msk [vmem:[#allocation2 + $0x18] sm:$0xff] %vm709_vm5, %v704_v36 }
 0x12c   : > { %v517_v38 = vpop.permute.xlu1 %516 }
 0x12d   : > { %528 = vst.msk [vmem:[#allocation2 + $0x8] sm:$0xff] %vm526_vm2, %v517_v38 }
 0x12e   : > { %589 = vst.msk [vmem:[#allocation2 + $0x8] sm:$0xff] %vm587_vm3, %v578_v37 }
 0x12f   : > { %v515_v39 = vpop.permute.xlu2 %514 }
 0x134   : > { %v454_v40 = vpop.permute.xlu1 %453 }
 0x135   : > { %466 = vst.msk [vmem:[#allocation2] sm:$0xff] %vm465_vm1, %v454_v40  ;;  %v765_v42 = vpop.permute.xlu0 %764 }
 0x136   : > { %527 = vst.msk [vmem:[#allocation2] sm:$0xff] %vm526_vm2, %v515_v39 }
 0x137   : > { %774 = vst.msk [vmem:[#allocation2 + $0x18] sm:$0xff] %vm770_vm6, %v765_v42 }
 0x138   : > { %v576_v43 = vpop.permute.xlu2 %575 }
 0x139   : > { %588 = vst.msk [vmem:[#allocation2] sm:$0xff] %vm587_vm3, %v576_v43 }
 0x13c   : > { %v826_v44 = vpop.permute.xlu1 %825 }
 0x13d   : > { %835 = vst.msk [vmem:[#allocation2 + $0x18] sm:$0xff] %vm831_vm7, %v826_v44 }
 0x13e   : > { %v702_v45 = vpop.permute.xlu0 %701 }
 0x13f   : > { %712 = vst.msk [vmem:[#allocation2 + $0x10] sm:$0xff] %vm709_vm5, %v702_v45 }
 0x140   : > { %v637_v46 = vpop.permute.xlu2 %636 }
 0x141   : > { %649 = vst.msk [vmem:[#allocation2] sm:$0xff] %vm648_vm4, %v637_v46 }
 0x144   : > { %v839_v47 = vld [vmem:[#allocation2 + $0x18] sm:$0xff]  ;;  %v763_v48 = vpop.permute.xlu1 %762 }
 0x145   : > { %893 = vmatpush.msra.mxu0 %v839_v47  ;;  %1215 = vmatpush.msra.mxu2 %v839_v47  ;;  %773 = vst.msk [vmem:[#allocation2 + $0x10] sm:$0xff] %vm770_vm6, %v763_v48 }
 0x146   : > { %v639_v49 = vpop.permute.xlu0 %638  ;;  %1216 = vmatpush.msra.mxu3 %v839_v47 }
 0x147   : > { %650 = vst.msk [vmem:[#allocation2 + $0x8] sm:$0xff] %vm648_vm4, %v639_v49 }
 0x148   : > { %v822_v51 = vpop.permute.xlu2 %821 }
 0x14e   : > { %v700_v15 = vpop.permute.xlu0 %699 }
 0x14f   : > { %711 = vst.msk [vmem:[#allocation2 + $0x8] sm:$0xff] %vm709_vm5, %v700_v15 }
 0x150   : > { %v866_v63 = vpop.permute.xlu2 %865 }
 0x156   : > { %v761_v50 = vpop.permute.xlu0 %760 }
 0x157   : > { %772 = vst.msk [vmem:[#allocation2 + $0x8] sm:$0xff] %vm770_vm6, %v761_v50 }
 0x158   : > { %833 = vst.msk [vmem:[#allocation2 + $0x8] sm:$0xff] %vm831_vm7, %v822_v51  ;;  %v851_v7 = vpop.permute.xlu2 %850 }
 0x159   : > { %v824_v52 = vpop.permute.xlu1 %823 }
 0x15a   : > { %834 = vst.msk [vmem:[#allocation2 + $0x10] sm:$0xff] %vm831_vm7, %v824_v52 }
 0x15e   : > { %v759_v56 = vpop.permute.xlu0 %758 }
 0x15f   : > { %v837_v54 = vld [vmem:[#allocation2 + $0x8] sm:$0xff] }
 0x161   : > { %v838_v53 = vld [vmem:[#allocation2 + $0x10] sm:$0xff] }
 0x162   : > { %894 = vmatpush.msra.mxu0 %v838_v53  ;;  %1217 = vmatpush.msra.mxu2 %v838_v53  ;;  %v698_v55 = vpop.permute.xlu1 %697 }
 0x163   : > { %1218 = vmatpush.msra.mxu3 %v838_v53  ;;  %710 = vst.msk [vmem:[#allocation2] sm:$0xff] %vm709_vm5, %v698_v55 }
 0x164   : > { %771 = vst.msk [vmem:[#allocation2] sm:$0xff] %vm770_vm6, %v759_v56  ;;  %895 = vmatpush.msra.mxu0 %v837_v54  ;;  %1219 = vmatpush.msra.mxu2 %v837_v54 }
 0x165   : > { %1220 = vmatpush.msra.mxu3 %v837_v54 }
 0x166   : > { %v861_v2 = vpop.permute.xlu0 %860 }
 0x16b   : > { %v820_v14 = vpop.permute.xlu1 %819 }
 0x16c   : > { %832 = vst.msk [vmem:[#allocation2] sm:$0xff] %vm831_vm7, %v820_v14 }
 0x16e   : > { %v935_v28 = vpop.permute.xlu0 %934 }
 0x173   : > { %v836_v59 = vld [vmem:[#allocation2] sm:$0xff]  ;;  %v856_v3 = vpop.permute.xlu1 %855 }
 0x174   : > { %896 = vmatpush.msra.mxu0 %v836_v59  ;;  %1221 = vmatpush.msra.mxu2 %v836_v59 }
 0x175   : > { %1222 = vmatpush.msra.mxu3 %v836_v59  ;;  %1198 = vmatmul.msk.f32.vlgmr.msra.gmra.mxu0 %vm868_vm8, %v840_v57 }
 0x176   : > { %1199 = vmatmul.msk.f32.vlgmr.msra.gmra.mxu2 %vm868_vm8, %v841_v60  ;;  %1200 = vmatmul.msk.f32.vlgmr.msra.gmra.mxu3 %vm868_vm8, %v842_v61 }
 0x17e   : > { %1201 = vmatmul.msk.f32.gmra.mxu3 %vm868_vm8, %v843_v62 }
 0x1f2   : > { %v898_v5 = vpop.f32.mrf.mxu0 }
 0x1f3   : > { %v899_v58 = vadd.f32 %v898_v5, %v851_v7 }
 0x1f5   : > { %v914_v12 = vmul.f32 1.442695, %v899_v58  ;;  %vm910_vm12 = vcmp.gt.f32.partialorder %v899_v58, 0.0 }
 0x1f9   : > { %v904_v0 = vpop.f32.mrf.mxu3  ;;  %v901_v1 = vpop.f32.mrf.mxu2 }
 0x1fa   : > { %v905_v4 = vadd.f32 %v904_v0, %v861_v2  ;;  %v902_v6 = vadd.f32 %v901_v1, %v856_v3 }
 0x1fc   : > { %v918_v8 = vmul.f32 1.442695, %v905_v4  ;;  %v916_v9 = vmul.f32 1.442695, %v902_v6  ;;  %vm912_vm10 = vcmp.gt.f32.partialorder %v905_v4, 0.0  ;;  %vm911_vm11 = vcmp.gt.f32.partialorder %v902_v6, 0.0 }
 0x1fe   : > { %1375 = vpow2.f32 %v918_v8 }
 0x1ff   : > { %1377 = vpow2.f32 %v916_v9 }
 0x201   : > { %v907_v10 = vpop.f32.mrf.mxu3 }
 0x202   : > { %v908_v11 = vadd.f32 %v907_v10, %v866_v63 }
 0x204   : > { %v920_v13 = vmul.f32 1.442695, %v908_v11  ;;  %v1376_v16 = vpop.eup %1375  ;;  %vm913_vm9 = vcmp.gt.f32.partialorder %v908_v11, 0.0 }
 0x205   : > { %v1378_v17 = vpop.eup %1377  ;;  %v1204_v20 = vadd.f32 -1.0, %v1376_v16 }
 0x206   : > { %1379 = vpow2.f32 %v920_v13  ;;  %v1203_v41 = vadd.f32 -1.0, %v1378_v17 }
 0x207   : > { %1381 = vpow2.f32 %v914_v12  ;;  %v928_v23 = vsel %vm912_vm10, %v905_v4, %v1204_v20 }
 0x208   : > { %v927_v25 = vsel %vm911_vm11, %v902_v6, %v1203_v41 }
 0x20c   : > { %v1380_v18 = vpop.eup %1379 }
 0x20d   : > { %v1205_v19 = vadd.f32 -1.0, %v1380_v18  ;;  %v1382_v21 = vpop.eup %1381 }
 0x20e   : > { %v1202_v24 = vadd.f32 -1.0, %v1382_v21 }
 0x20f   : > { %v929_v22 = vsel %vm913_vm9, %v908_v11, %v1205_v19 }
 0x210   : > { %952 = vmatpush.msra.mxu1 %v929_v22  ;;  %v926_v27 = vsel %vm910_vm12, %v899_v58, %v1202_v24 }
 0x212   : > { %953 = vmatpush.msra.mxu1 %v928_v23 }
 0x214   : > { %954 = vmatpush.msra.mxu1 %v927_v25 }
 0x216   : > { %955 = vmatpush.msra.mxu1 %v926_v27 }
 0x217   : > { %1206 = vmatmul.msk.f32.vlgmr.msra.gmra.mxu1 %vm868_vm8, %v930_v26 }
 0x294   : > { %v957_v29 = vpop.f32.mrf.mxu1 }
 0x295   : > { %v958_v31 = vadd.f32 %v957_v29, %v935_v28 }
 0x297   : > { %v961_v32 = vsel %vm960_vm13, %v958_v31, -inf  ;;  %v982_v33 = vadd.f32 %v981_v30, %v958_v31 }
 0x298   : > { %v962_v34 = vrot.slane %v961_v32, 4 }
 0x299   : > { %v983_v35 = vmul.f32 2.0, %v982_v33 }
 0x29a   : > { %v963_v36 = vmax.f32 %v961_v32, %v962_v34 }
 0x29b   : > { %v984_v37 = vsel %vm960_vm13, %v983_v35, -inf }
 0x29c   : > { %v964_v38 = vrot.slane %v963_v36, 2  ;;  %v985_v39 = vrot.slane %v984_v37, 4 }
 0x29e   : > { %v965_v40 = vmax.f32 %v963_v36, %v964_v38  ;;  %v986_v42 = vmax.f32 %v984_v37, %v985_v39 }
 0x2a0   : > { %v966_v43 = vrot.slane %v965_v40, 1  ;;  %v987_v44 = vrot.slane %v986_v42, 2 }
 0x2a2   : > { %v967_v45 = vmax.f32 %v965_v40, %v966_v43  ;;  %v988_v46 = vmax.f32 %v986_v42, %v987_v44 }
 0x2a4   : > { %v968_v47 = vsub.f32 %v958_v31, %v967_v45  ;;  %v989_v48 = vrot.slane %v988_v46, 1 }
 0x2a6   : > { %v969_v49 = vmul.f32 1.442695, %v968_v47  ;;  %v990_v15 = vmax.f32 %v988_v46, %v989_v48 }
 0x2a8   : > { %1383 = vpow2.f32 %v969_v49  ;;  %v991_v50 = vsub.f32 %v983_v35, %v990_v15 }
 0x2aa   : > { %v992_v51 = vmul.f32 1.442695, %v991_v50 }
 0x2ac   : > { %1385 = vpow2.f32 %v992_v51 }
 0x2ae   : > { %v1384_v52 = vpop.eup %1383 }
 0x2af   : > { %v971_v53 = vsel %vm960_vm13, %v1384_v52, 0.0 }
 0x2b0   : > { %v972_v54 = vrot.slane %v971_v53, 4 }
 0x2b2   : > { %v1386_v55 = vpop.eup %1385  ;;  %v973_v56 = vadd.f32 %v972_v54, %v971_v53 }
 0x2b3   : > { %v994_v14 = vsel %vm960_vm13, %v1386_v55, 0.0 }
 0x2b4   : > { %v974_v57 = vrot.slane %v973_v56, 2  ;;  %v995_v59 = vrot.slane %v994_v14, 4 }
 0x2b6   : > { %v975_v60 = vadd.f32 %v974_v57, %v973_v56  ;;  %v996_v61 = vadd.f32 %v995_v59, %v994_v14 }
 0x2b8   : > { %v997_v62 = vrot.slane %v996_v61, 2  ;;  %v976_v63 = vrot.slane %v975_v60, 1 }
 0x2ba   : > { %v998_v0 = vadd.f32 %v997_v62, %v996_v61  ;;  %v977_v1 = vadd.f32 %v976_v63, %v975_v60 }
 0x2bc   : > { %v999_v2 = vrot.slane %v998_v0, 1  ;;  %1387 = vrcp.f32 %v977_v1 }
 0x2be   : > { %v1000_v3 = vadd.f32 %v999_v2, %v998_v0 }
 0x2c0   : > { %1389 = vrcp.f32 %v1000_v3 }
 0x2c2   : > { %v1388_v4 = vpop.eup %1387 }
 0x2c3   : > { %v979_v5 = vmul.f32 %v1388_v4, %v1384_v52 }
 0x2c5   : > { %980 = vst.msk [vmem:[%s337_s25] sm:$0x3] %vm960_vm13, %v979_v5 }
 0x2c6   : > { %v1390_v6 = vpop.eup %1389 }
 0x2c7   : > { %1418 = shalt.err (!%p1415_p3)
}
 0x2c8   : > { %1224 = dma.vmem_to_hbm [thread:$0]  (%p1585_p5), %s1037_s26, 32, %s1039_s10, %s1010_s22   ;;  %v1002_v7 = vmul.f32 %v1390_v6, %v1386_v55 }
 0x2c9   : > { %s1005_s21 = scalar_lea.sflag [#allocation4], %s1811_s17  ;;  %s1433_s25 = sshra.s32 %s1025_s0, 4  ;;  %s1434_s25 = int_to_ptr.hbm [resolvable:$true] %s1433_s25 }
 0x2ca   : > { %1003 = vst.msk [vmem:[%s330_s9] sm:$0x3] %vm960_vm13, %v1002_v7  ;;  %s1435_s18 = scalar_lea.hbm %s1434_s25, 2  ;;  %s1439_s23 = scalar_lea.hbm %s1869_s7, 4 }
 0x2cb   : > { %p1436_p4 = scmp.ne.s32.totalorder %s1434_s25, %s1435_s18  ;;  %p1440_p9 = scmp.lt.s32.totalorder %s1434_s25, %s1869_s7 }
 0x2cc   : > { %p1441_p10 = scmp.lt.s32.totalorder %s1439_s23, %s1435_s18 }
 0x2cd   : > { %p1437_p7 = pnand %p1436_p4, %p1585_p5 }
 0x2ce   : > { %p1442_p11 = por %p1441_p10, %p1440_p9 }
 0x2cf   : > { %p1438_p8 = pneg %p1437_p7 }
 0x2d1   : > { %p1443_p12 = pnand %p1442_p11, %p1438_p8 }
 0x2d3   : > { %1446 = shalt.err (!%p1443_p12)
}
 0x2d4   : > { %1223 = dma.vmem_to_hbm [thread:$0]  (%p1585_p5), %s1023_s19, 32, %s1025_s0, %s1005_s21  }
 0x2d5 PF: > { %p1234_p13 = scmp.ge.s32.totalorder %s1485_s30, 2  ;;  %s1050_s17 = sand.u32 1, %s1473_s27  }
 0x2d6   : > { %s1051_s26 = scalar_lea.sflag [#allocation4], %s1050_s17 }
 0x2d7   : > { %p1228_p0 = pnand %p1234_p13, %p1589_p6 }
 0x2d9   : > { %p1229_p1 = pneg %p1228_p0 }
 0x2db   : > { %1464 = dma.done.wait (%p1229_p1), %s1051_s26, 32  }
 0x2dc   : > { %1466 = vsyncadd (%p1229_p1), %s1051_s26, 4294967264  ;;  %s1061_s10 = scalar_lea.sflag [#allocation6], %s1050_s17 }
 0x2dd   : > { %1468 = dma.done.wait (%p1229_p1), %s1061_s10, 32  }
 0x2de   : > { %1470 = vsyncadd (%p1229_p1), %s1061_s10, 4294967264  ;;  %p22_p5 = scmp.ge.s32.totalorder %s1572_s11, 4   ;;  %s1879_s27 = smov %s1477_s28 }
 0x2df   : > { %s1880_s28 = smov %s1481_s29  ;;  %s1881_s29 = smov %s1583_s14 }
 0x2e0   : > { %s1882_s30 = smov %s1572_s11  ;;  %24 = sbr.rel (!%p22_p5) target bundleno = 9 (0x9), region = 106 }
 0x2e5   :  { %1067 = vsyncpa [#allocation4], 1 }
 0x2e6   :  { %1069 = vsyncpa [#allocation4 + $0x1], 1 }
 0x2e7   :  { %1070 = vsyncpa [#allocation6], 1 }
 0x2e8   :  { %1072 = vsyncpa [#allocation6 + $0x1], 1 }

</bundles_post_ra>
